<compile_context>
chip_gen: v5e
topology: v5e:2x2
jax: 0.10.0
libtpu: 0.0.40
codegen_flags: <defaults>
</compile_context>

<pallas_src>
import jax
import jax.numpy as jnp
import numpy as np
from jax.experimental import pallas as pl
from jax.experimental.pallas import tpu as pltpu

GROUP_SLICES = [
    (0, 12), (12, 18), (18, 23), (23, 29), (29, 34),
    (34, 35), (35, 36), (36, 37), (37, 38),
]
NUM_GROUPS = len(GROUP_SLICES)   # 9
FEAT_DIM = 38                    # total input feature width
GATE_LANES = 16                  # gate path padded 9 -> 16 lanes (lane-aligned acc)
OUT_LANES = 128                  # lane-dense packed output width
NEG_INF = -1e30                  # softmax mask value for the padded gate lanes


def _attention_kernel(xw_ref, x_i_ref, a_ref, bg_ref, wf_ref, bf_ref,
                      r_ref, cout_ref, cattn_ref, out_ref, acc_ref):
    """Grid (i, k): i = output row tile (parallel), k = adjacency K tile (reduction)."""
    k = pl.program_id(1)
    nk = pl.num_programs(1)

    @pl.when(k == 0)
    def _init():
        acc_ref[...] = jnp.zeros_like(acc_ref)

    # Gate aggregation for this K tile: bf16 A tile x bf16 (x @ Wg) tile on the MXU,
    # f32 accumulation.  No explicit upcast (that would be a full (tm, tk) VPU pass).
    acc_ref[...] += jnp.dot(a_ref[...], xw_ref[...],
                            preferred_element_type=jnp.float32)           # (tm, 16)

    @pl.when(k == nk - 1)
    def _finalize():
        # softmax over the gates; pad lanes carry a -1e30 bias -> exactly zero weight.
        logits = acc_ref[...] + bg_ref[...]                               # (tm, 16)
        m = jnp.max(logits, axis=-1, keepdims=True)
        e = jnp.exp(logits - m)
        attn = e * pl.reciprocal(jnp.sum(e, axis=-1, keepdims=True), approx=False)

        # Per-group Linear(in_k, G) packed block-diagonally into (38, 9*G).
        feats = jnp.dot(x_i_ref[...], wf_ref[...],
                        preferred_element_type=jnp.float32) + bf_ref[...]  # (tm, 9*G)

        # Lane-dense weighted group sum on the MXU:
        #   attn_rep = attn @ R      (repeat each gate G times along lanes)
        #   weighted = feats * attn_rep              (one full-vreg VPU multiply)
        #   packed   = weighted @ C_out + attn @ C_attn
        # C_out sums groups into lanes [0, G); C_attn copies attention into lanes
        # [G, G+9); remaining lanes are zero.  One unmasked 128-lane store.
        attn_rep = jnp.dot(attn, r_ref[...], preferred_element_type=jnp.float32)
        weighted = feats * attn_rep
        out_ref[...] = (
            jnp.dot(weighted, cout_ref[...], preferred_element_type=jnp.float32)
            + jnp.dot(attn, cattn_ref[...], preferred_element_type=jnp.float32))


def build_dense_gcn_norm(edge_index, num_nodes):
    """Dense D^{-1/2} (A + I) D^{-1/2}, matching torch_geometric GCNConv defaults."""
    src, dst = edge_index[0], edge_index[1]
    a = jnp.zeros((num_nodes, num_nodes), dtype=jnp.float32)
    a = a.at[dst, src].add(1.0)                     # message flows source -> target
    a = a + jnp.eye(num_nodes, dtype=jnp.float32)   # add self-loops
    deg = jnp.sum(a, axis=1)
    dinv = jnp.where(deg > 0, 1.0 / jnp.sqrt(deg), 0.0)
    return dinv[:, None] * a * dinv[None, :]


def _build_select_mats(group_feats):
    """Static 0/1 matrices for the lane-dense weighted group sum / output packing."""
    gf = group_feats
    r = np.zeros((GATE_LANES, NUM_GROUPS * gf), np.float32)      # repeat gate gf times
    c_out = np.zeros((NUM_GROUPS * gf, OUT_LANES), np.float32)   # sum groups -> lanes [0, gf)
    c_attn = np.zeros((GATE_LANES, OUT_LANES), np.float32)       # copy attn -> lanes [gf, gf+9)
    for k in range(NUM_GROUPS):
        r[k, k * gf:(k + 1) * gf] = 1.0
        for f in range(gf):
            c_out[k * gf + f, f] = 1.0
        c_attn[k, gf + k] = 1.0
    return jnp.asarray(r), jnp.asarray(c_out), jnp.asarray(c_attn)


def init_params(key, group_feats):
    """Deterministic synthetic parameters with the module's shapes."""
    keys = jax.random.split(key, 4 * NUM_GROUPS)
    wg = jnp.zeros((FEAT_DIM, NUM_GROUPS), dtype=jnp.float32)
    bg = jnp.zeros((1, NUM_GROUPS), dtype=jnp.float32)
    wf = jnp.zeros((FEAT_DIM, NUM_GROUPS * group_feats), dtype=jnp.float32)
    bf = jnp.zeros((1, NUM_GROUPS * group_feats), dtype=jnp.float32)
    for k, (lo, hi) in enumerate(GROUP_SLICES):
        in_k = hi - lo
        # GCNConv(in_k, 1): weight (1, in_k), bias (1,)
        w_gate = jax.random.normal(keys[4 * k + 0], (in_k, 1), jnp.float32) * 0.3
        b_gate = jax.random.normal(keys[4 * k + 1], (1,), jnp.float32) * 0.1
        wg = wg.at[lo:hi, k:k + 1].set(w_gate)
        bg = bg.at[0, k].set(b_gate[0])
        # Linear(in_k, G): weight (G, in_k), bias (G,)
        w_feat = jax.random.normal(keys[4 * k + 2], (in_k, group_feats), jnp.float32) * 0.3
        b_feat = jax.random.normal(keys[4 * k + 3], (group_feats,), jnp.float32) * 0.1
        wf = wf.at[lo:hi, k * group_feats:(k + 1) * group_feats].set(w_feat)
        bf = bf.at[0, k * group_feats:(k + 1) * group_feats].set(b_feat)
    return wg, bg, wf, bf


def my_attention_module3(x, edge_index, wg, bg, wf, bf, group_feats,
                         *, tm=512, tk=2048, a_dtype=jnp.bfloat16, a_buffer_count=2):
    """Forward pass of MyAttentionModule3.

    tm: output row tile (multiple of 8), tk: adjacency K tile (multiple of 128).
    Tuning: v5e tm=512,tk=2048 (fits 16 MiB scoped default); v6e tk=2048..4096;
    v7x grow tk (not tm) and keep n_rows_pad/tm >= 2 so both TensorCores get row tiles.
    """
    n = x.shape[0]
    gf = group_feats
    assert gf + NUM_GROUPS <= OUT_LANES, "packed output exceeds 128 lanes"
    assert NUM_GROUPS <= GATE_LANES
    assert tm % 8 == 0 and tk % 128 == 0

    # Rectangular padding: rows -> multiple of tm, columns (K axis) -> multiple of tk.
    n_rows = pl.cdiv(n, tm) * tm
    n_cols = pl.cdiv(n, tk) * tk

    x = x.astype(jnp.float32)
    x_rows = jnp.zeros((n_rows, FEAT_DIM), jnp.float32).at[:n, :].set(x)

    # Gate projection hoisted out of the kernel's K loop: one (N, 9) XLA matmul,
    # padded to 16 lanes and streamed in bf16 as the K-tile operand.
    xw = x @ wg                                                        # (n, 9) f32
    xw_pad = (jnp.zeros((n_cols, GATE_LANES), jnp.float32)
              .at[:n, :NUM_GROUPS].set(xw)).astype(a_dtype)

    # Dense normalized adjacency, built in f32 then padded directly into a bf16 buffer
    # (no f32 (n_rows, n_cols) transient).
    # TODO(synk): for large sparse graphs, replace the dense A_norm with a CSR /
    # edge-offset gather via PrefetchScalarGridSpec to avoid O(N^2) HBM traffic.
    a_norm = build_dense_gcn_norm(edge_index, n)
    a_pad = (jnp.zeros((n_rows, n_cols), a_dtype)
             .at[:n, :n].set(a_norm.astype(a_dtype)))

    bg_pad = (jnp.full((1, GATE_LANES), NEG_INF, jnp.float32)
              .at[0, :NUM_GROUPS].set(bg[0]))
    r_rep, c_out, c_attn = _build_select_mats(gf)

    n_i, n_k = n_rows // tm, n_cols // tk
    grid = (n_i, n_k)
    a_bytes = jnp.dtype(a_dtype).itemsize

    flops = (
        2 * n_rows * n_cols * GATE_LANES                   # A @ xw aggregation
        + 2 * n_rows * FEAT_DIM * NUM_GROUPS * gf          # x @ Wf
        + 2 * n_rows * GATE_LANES * NUM_GROUPS * gf        # attn @ R
        + 2 * n_rows * NUM_GROUPS * gf * OUT_LANES         # weighted @ C_out
        + 2 * n_rows * GATE_LANES * OUT_LANES              # attn @ C_attn
    )
    bytes_accessed = (
        n_rows * n_cols * a_bytes                          # adjacency stream (bf16)
        + n_i * n_cols * GATE_LANES * a_bytes              # xw re-streamed per row tile
        + n_rows * FEAT_DIM * 4                            # x row tiles (once per row tile)
        + n_rows * OUT_LANES * 4                           # packed output
    )
    cost = pl.CostEstimate(flops=flops,
                           transcendentals=n_rows * GATE_LANES,
                           bytes_accessed=bytes_accessed)

    # VMEM budget; raise the scoped limit only when big tiles need it (v5e default ~16 MiB),
    # while staying under v7x's 64 MiB physical VMEM.
    vmem_est = (max(a_buffer_count, 2) * tm * tk * a_bytes     # A tiles
                + 2 * tk * GATE_LANES * a_bytes                # xw tiles
                + 2 * tm * FEAT_DIM * 4                        # x row tiles
                + 2 * tm * OUT_LANES * 4                       # packed output tiles
                + tm * GATE_LANES * 4                          # f32 accumulator scratch
                + 256 * 1024)                                  # resident weights / consts
    vmem_limit = None
    if vmem_est > 12 * 1024 * 1024:
        vmem_limit = min(int(vmem_est * 3 // 2), 56 * 1024 * 1024)

    a_spec_kwargs = {}
    if a_buffer_count != 2:
        # Extra buffering on the HBM-roofline A stream if xprof shows exposed DMA.
        a_spec_kwargs["pipeline_mode"] = pl.Buffered(a_buffer_count)

    combined = pl.pallas_call(
        _attention_kernel,
        out_shape=jax.ShapeDtypeStruct((n_rows, OUT_LANES), jnp.float32),
        grid_spec=pltpu.PrefetchScalarGridSpec(
            num_scalar_prefetch=0,
            grid=grid,
            in_specs=[
                pl.BlockSpec((tk, GATE_LANES), lambda i, k: (k, 0)),               # xw (bf16, K rows)
                pl.BlockSpec((tm, FEAT_DIM), lambda i, k: (i, 0)),                 # x (out-tile rows)
                pl.BlockSpec((tm, tk), lambda i, k: (i, k), **a_spec_kwargs),      # A_norm tile (bf16)
                pl.BlockSpec((1, GATE_LANES), lambda i, k: (0, 0)),                # bg (padded)
                pl.BlockSpec((FEAT_DIM, NUM_GROUPS * gf), lambda i, k: (0, 0)),    # Wf
                pl.BlockSpec((1, NUM_GROUPS * gf), lambda i, k: (0, 0)),           # bf
                pl.BlockSpec((GATE_LANES, NUM_GROUPS * gf), lambda i, k: (0, 0)),  # R (repeat)
                pl.BlockSpec((NUM_GROUPS * gf, OUT_LANES), lambda i, k: (0, 0)),   # C_out
                pl.BlockSpec((GATE_LANES, OUT_LANES), lambda i, k: (0, 0)),        # C_attn
            ],
            out_specs=pl.BlockSpec((tm, OUT_LANES), lambda i, k: (i, 0)),
            scratch_shapes=[pltpu.VMEM((tm, GATE_LANES), jnp.float32)],            # logits acc
        ),
        compiler_params=pltpu.CompilerParams(
            dimension_semantics=("parallel", "arbitrary"),
            vmem_limit_bytes=vmem_limit),
        cost_estimate=cost,
    )(xw_pad, x_rows, a_pad, bg_pad, wf, bf, r_rep, c_out, c_attn)

    out = combined[:n, :gf]
    attn = combined[:n, gf:gf + NUM_GROUPS]
    # attention returned as (N, 9, 1) to match torch's unsqueeze(-1)
    return out, attn[:, :, None]


def reference_forward(x, edge_index, wg, bg, wf, bf, group_feats, *, quantize_bf16=False):
    """Pure-JAX reference.  quantize_bf16=True mirrors the kernel's bf16 A / x@Wg streams."""
    x = x.astype(jnp.float32)
    a_norm = build_dense_gcn_norm(edge_index, x.shape[0])
    xw = x @ wg
    if quantize_bf16:
        a_norm = a_norm.astype(jnp.bfloat16).astype(jnp.float32)
        xw = xw.astype(jnp.bfloat16).astype(jnp.float32)
    logits = a_norm @ xw + bg
    attn = jax.nn.softmax(logits, axis=-1)
    feats = (x @ wf + bf).reshape(x.shape[0], NUM_GROUPS, group_feats)
    out = jnp.sum(feats * attn[:, :, None], axis=1)
    return out, attn[:, :, None]


if __name__ == "__main__":
    GROUP_FEATS = 4
    N = 200                       # number of graph nodes (small demo)

    key = jax.random.PRNGKey(0)
    kx, kp = jax.random.split(key)

    # node features (N, 38)
    x = jax.random.normal(kx, (N, FEAT_DIM), jnp.float32)

    # simple undirected ring graph: edges i <-> (i+1) mod N  -> edge_index (2, 2N)
    src = jnp.arange(N, dtype=jnp.int32)
    dst = (src + 1) % N
    edge_index = jnp.stack([jnp.concatenate([src, dst]),
                            jnp.concatenate([dst, src])], axis=0)

    wg, bg, wf, bf = init_params(kp, GROUP_FEATS)

    # Small tiles for the demo so the 2-D grid (4 row tiles x 2 K tiles) and the K-axis
    # accumulator are actually exercised (rows pad 200 -> 256, cols pad 200 -> 256).
    out, attn = my_attention_module3(x, edge_index, wg, bg, wf, bf, GROUP_FEATS,
                                     tm=64, tk=128)
    out, attn = jax.block_until_ready((out, attn))

    assert out.shape == (N, GROUP_FEATS)
    assert attn.shape == (N, NUM_GROUPS, 1)

    # Tight check against a reference that mirrors the kernel's bf16-quantized
    # adjacency and gate-projection streams.
    ref_out, ref_attn = reference_forward(x, edge_index, wg, bg, wf, bf, GROUP_FEATS,
                                          quantize_bf16=True)
    assert jnp.allclose(out, ref_out, atol=2e-4, rtol=2e-4)
    assert jnp.allclose(attn, ref_attn, atol=2e-4, rtol=2e-4)

    # Loose sanity check against the pure-f32 module semantics: the only approximation
    # is the bf16 storage of the normalized adjacency and the x@Wg stream.
    ref_out32, ref_attn32 = reference_forward(x, edge_index, wg, bg, wf, bf, GROUP_FEATS,
                                              quantize_bf16=False)
    assert float(jnp.max(jnp.abs(out - ref_out32))) < 0.15
    assert float(jnp.max(jnp.abs(attn - ref_attn32))) < 0.05

    print("KERNEL_OK")
</pallas_src>

<mosaic_0001>
module attributes {stable_mosaic.version = 11 : i64} {
  func.func @_attention_kernel(%arg0: i32, %arg1: i32, %arg2: memref<128x16xbf16, #tpu.memory_space<vmem>>, %arg3: memref<64x38xf32, #tpu.memory_space<vmem>>, %arg4: memref<64x128xbf16, #tpu.memory_space<vmem>>, %arg5: memref<1x16xf32, #tpu.memory_space<vmem>>, %arg6: memref<38x36xf32, #tpu.memory_space<vmem>>, %arg7: memref<1x36xf32, #tpu.memory_space<vmem>>, %arg8: memref<16x36xf32, #tpu.memory_space<vmem>>, %arg9: memref<36x128xf32, #tpu.memory_space<vmem>>, %arg10: memref<16x128xf32, #tpu.memory_space<vmem>>, %arg11: memref<64x128xf32, #tpu.memory_space<vmem>>, %arg12: memref<64x16xf32, #tpu.memory_space<vmem>>) attributes {dimension_semantics = [#tpu.dimension_semantics<parallel>, #tpu.dimension_semantics<arbitrary>], iteration_bounds = array<i64: 4, 2>, scalar_prefetch = 0 : i64, scratch_operands = 1 : i64, tpu.core_type = #tpu.core_type<tc>, window_params = [{transform_indices = @transform_0, window_bounds = array<i64: 128, 16>}, {transform_indices = @transform_1, window_bounds = array<i64: 64, 38>}, {transform_indices = @transform_2, window_bounds = array<i64: 64, 128>}, {pipeline_mode = #tpu.pipeline_mode<synchronous>, transform_indices = @transform_3, window_bounds = array<i64: 1, 16>}, {pipeline_mode = #tpu.pipeline_mode<synchronous>, transform_indices = @transform_4, window_bounds = array<i64: 38, 36>}, {pipeline_mode = #tpu.pipeline_mode<synchronous>, transform_indices = @transform_5, window_bounds = array<i64: 1, 36>}, {pipeline_mode = #tpu.pipeline_mode<synchronous>, transform_indices = @transform_6, window_bounds = array<i64: 16, 36>}, {pipeline_mode = #tpu.pipeline_mode<synchronous>, transform_indices = @transform_7, window_bounds = array<i64: 36, 128>}, {pipeline_mode = #tpu.pipeline_mode<synchronous>, transform_indices = @transform_8, window_bounds = array<i64: 16, 128>}, {transform_indices = @transform_9, window_bounds = array<i64: 64, 128>}]} {
    %c0_i32 = arith.constant 0 : i32
    %0 = arith.cmpi eq, %arg1, %c0_i32 : i32
    %1 = arith.extui %0 : i1 to i32
    %c0_i32_0 = arith.constant 0 : i32
    %2 = arith.cmpi ne, %1, %c0_i32_0 : i32
    scf.if %2 {
      %cst_9 = arith.constant 0.000000e+00 : f32
      %12 = vector.broadcast %cst_9 : f32 to vector<64x16xf32>
      %c0_10 = arith.constant 0 : index
      %c0_11 = arith.constant 0 : index
      %13 = vector.load %arg12[%c0_10, %c0_11] : memref<64x16xf32, #tpu.memory_space<vmem>>, vector<64x16xf32>
      tpu.vector_store %arg12[%c0_10, %c0_11], %12 {strides = array<i32>} : memref<64x16xf32, #tpu.memory_space<vmem>>, vector<64x16xf32>,
    } else {
    }
    %c0 = arith.constant 0 : index
    %c0_1 = arith.constant 0 : index
    %3 = vector.load %arg12[%c0, %c0_1] : memref<64x16xf32, #tpu.memory_space<vmem>>, vector<64x16xf32>
    %c0_2 = arith.constant 0 : index
    %c0_3 = arith.constant 0 : index
    %4 = vector.load %arg4[%c0_2, %c0_3] : memref<64x128xbf16, #tpu.memory_space<vmem>>, vector<64x128xbf16>
    %c0_4 = arith.constant 0 : index
    %c0_5 = arith.constant 0 : index
    %5 = vector.load %arg2[%c0_4, %c0_5] : memref<128x16xbf16, #tpu.memory_space<vmem>>, vector<128x16xbf16>
    %cst = arith.constant dense<0.000000e+00> : vector<64x16xf32>
    %6 = tpu.matmul %4, %5, %cst {dimension_numbers = #tpu.dot_dimension_numbers<[1], [0], [0], [1], [0, 0, 1, 1], [], []>} : vector<64x128xbf16>, vector<128x16xbf16>, vector<64x16xf32> -> vector<64x16xf32>
    %7 = arith.addf %3, %6 : vector<64x16xf32>
    %c0_6 = arith.constant 0 : index
    %c0_7 = arith.constant 0 : index
    %8 = vector.load %arg12[%c0_6, %c0_7] : memref<64x16xf32, #tpu.memory_space<vmem>>, vector<64x16xf32>
    tpu.vector_store %arg12[%c0_6, %c0_7], %7 {strides = array<i32>} : memref<64x16xf32, #tpu.memory_space<vmem>>, vector<64x16xf32>,
    %c1_i32 = arith.constant 1 : i32
    %9 = arith.cmpi eq, %arg1, %c1_i32 : i32
    %10 = arith.extui %9 : i1 to i32
    %c0_i32_8 = arith.constant 0 : i32
    %11 = arith.cmpi ne, %10, %c0_i32_8 : i32
    scf.if %11 {
      %c0_9 = arith.constant 0 : index
      %c0_10 = arith.constant 0 : index
      %12 = vector.load %arg12[%c0_9, %c0_10] : memref<64x16xf32, #tpu.memory_space<vmem>>, vector<64x16xf32>
      %c0_11 = arith.constant 0 : index
      %c0_12 = arith.constant 0 : index
      %13 = vector.load %arg5[%c0_11, %c0_12] : memref<1x16xf32, #tpu.memory_space<vmem>>, vector<1x16xf32>
      %14 = vector.broadcast %13 : vector<1x16xf32> to vector<64x16xf32>
      %15 = arith.addf %12, %14 : vector<64x16xf32>
      %cst_13 = arith.constant dense<0xFF800000> : vector<64xf32>
      %16 = vector.multi_reduction <maximumf>, %15, %cst_13 [1] : vector<64x16xf32> to vector<64xf32>
      %17 = vector.shape_cast %16 : vector<64xf32> to vector<64x1xf32>
      %18 = vector.broadcast %17 : vector<64x1xf32> to vector<64x16xf32>
      %19 = arith.subf %15, %18 : vector<64x16xf32>
      %20 = math.exp %19 : vector<64x16xf32>
      %cst_14 = arith.constant dense<0.000000e+00> : vector<64xf32>
      %21 = vector.multi_reduction <add>, %20, %cst_14 [1] : vector<64x16xf32> to vector<64xf32>
      %22 = vector.shape_cast %21 : vector<64xf32> to vector<64x1xf32>
      %23 = tpu.reciprocal %22 : vector<64x1xf32> -> vector<64x1xf32>
      %24 = vector.broadcast %23 : vector<64x1xf32> to vector<64x16xf32>
      %25 = arith.mulf %20, %24 : vector<64x16xf32>
      %c0_15 = arith.constant 0 : index
      %c0_16 = arith.constant 0 : index
      %26 = vector.load %arg3[%c0_15, %c0_16] : memref<64x38xf32, #tpu.memory_space<vmem>>, vector<64x38xf32>
      %c0_17 = arith.constant 0 : index
      %c0_18 = arith.constant 0 : index
      %27 = vector.load %arg6[%c0_17, %c0_18] : memref<38x36xf32, #tpu.memory_space<vmem>>, vector<38x36xf32>
      %cst_19 = arith.constant dense<0.000000e+00> : vector<64x36xf32>
      %28 = tpu.matmul %26, %27, %cst_19 {dimension_numbers = #tpu.dot_dimension_numbers<[1], [0], [0], [1], [0, 0, 1, 1], [], []>} : vector<64x38xf32>, vector<38x36xf32>, vector<64x36xf32> -> vector<64x36xf32>
      %c0_20 = arith.constant 0 : index
      %c0_21 = arith.constant 0 : index
      %29 = vector.load %arg7[%c0_20, %c0_21] : memref<1x36xf32, #tpu.memory_space<vmem>>, vector<1x36xf32>
      %30 = vector.broadcast %29 : vector<1x36xf32> to vector<64x36xf32>
      %31 = arith.addf %28, %30 : vector<64x36xf32>
      %c0_22 = arith.constant 0 : index
      %c0_23 = arith.constant 0 : index
      %32 = vector.load %arg8[%c0_22, %c0_23] : memref<16x36xf32, #tpu.memory_space<vmem>>, vector<16x36xf32>
      %cst_24 = arith.constant dense<0.000000e+00> : vector<64x36xf32>
      %33 = tpu.matmul %25, %32, %cst_24 {dimension_numbers = #tpu.dot_dimension_numbers<[1], [0], [0], [1], [0, 0, 1, 1], [], []>} : vector<64x16xf32>, vector<16x36xf32>, vector<64x36xf32> -> vector<64x36xf32>
      %34 = arith.mulf %31, %33 : vector<64x36xf32>
      %c0_25 = arith.constant 0 : index
      %c0_26 = arith.constant 0 : index
      %35 = vector.load %arg9[%c0_25, %c0_26] : memref<36x128xf32, #tpu.memory_space<vmem>>, vector<36x128xf32>
      %cst_27 = arith.constant dense<0.000000e+00> : vector<64x128xf32>
      %36 = tpu.matmul %34, %35, %cst_27 {dimension_numbers = #tpu.dot_dimension_numbers<[1], [0], [0], [1], [0, 0, 1, 1], [], []>} : vector<64x36xf32>, vector<36x128xf32>, vector<64x128xf32> -> vector<64x128xf32>
      %c0_28 = arith.constant 0 : index
      %c0_29 = arith.constant 0 : index
      %37 = vector.load %arg10[%c0_28, %c0_29] : memref<16x128xf32, #tpu.memory_space<vmem>>, vector<16x128xf32>
      %cst_30 = arith.constant dense<0.000000e+00> : vector<64x128xf32>
      %38 = tpu.matmul %25, %37, %cst_30 {dimension_numbers = #tpu.dot_dimension_numbers<[1], [0], [0], [1], [0, 0, 1, 1], [], []>} : vector<64x16xf32>, vector<16x128xf32>, vector<64x128xf32> -> vector<64x128xf32>
      %39 = arith.addf %36, %38 : vector<64x128xf32>
      %c0_31 = arith.constant 0 : index
      %c0_32 = arith.constant 0 : index
      %40 = vector.load %arg11[%c0_31, %c0_32] : memref<64x128xf32, #tpu.memory_space<vmem>>, vector<64x128xf32>
      tpu.vector_store %arg11[%c0_31, %c0_32], %39 {strides = array<i32>} : memref<64x128xf32, #tpu.memory_space<vmem>>, vector<64x128xf32>,
    } else {
    }
    return
  }
  func.func @transform_0(%arg0: i32, %arg1: i32) -> (i32, i32) {
    %c0_i32 = arith.constant 0 : i32
    %c0_i32_0 = arith.constant 0 : i32
    return %arg1, %c0_i32 : i32, i32
  }
  func.func @transform_1(%arg0: i32, %arg1: i32) -> (i32, i32) {
    %c0_i32 = arith.constant 0 : i32
    %c0_i32_0 = arith.constant 0 : i32
    return %arg0, %c0_i32 : i32, i32
  }
  func.func @transform_2(%arg0: i32, %arg1: i32) -> (i32, i32) {
    %c0_i32 = arith.constant 0 : i32
    return %arg0, %arg1 : i32, i32
  }
  func.func @transform_3(%arg0: i32, %arg1: i32) -> (i32, i32) {
    %c0_i32 = arith.constant 0 : i32
    %c0_i32_0 = arith.constant 0 : i32
    %c0_i32_1 = arith.constant 0 : i32
    return %c0_i32, %c0_i32_0 : i32, i32
  }
  func.func @transform_4(%arg0: i32, %arg1: i32) -> (i32, i32) {
    %c0_i32 = arith.constant 0 : i32
    %c0_i32_0 = arith.constant 0 : i32
    %c0_i32_1 = arith.constant 0 : i32
    return %c0_i32, %c0_i32_0 : i32, i32
  }
  func.func @transform_5(%arg0: i32, %arg1: i32) -> (i32, i32) {
    %c0_i32 = arith.constant 0 : i32
    %c0_i32_0 = arith.constant 0 : i32
    %c0_i32_1 = arith.constant 0 : i32
    return %c0_i32, %c0_i32_0 : i32, i32
  }
  func.func @transform_6(%arg0: i32, %arg1: i32) -> (i32, i32) {
    %c0_i32 = arith.constant 0 : i32
    %c0_i32_0 = arith.constant 0 : i32
    %c0_i32_1 = arith.constant 0 : i32
    return %c0_i32, %c0_i32_0 : i32, i32
  }
  func.func @transform_7(%arg0: i32, %arg1: i32) -> (i32, i32) {
    %c0_i32 = arith.constant 0 : i32
    %c0_i32_0 = arith.constant 0 : i32
    %c0_i32_1 = arith.constant 0 : i32
    return %c0_i32, %c0_i32_0 : i32, i32
  }
  func.func @transform_8(%arg0: i32, %arg1: i32) -> (i32, i32) {
    %c0_i32 = arith.constant 0 : i32
    %c0_i32_0 = arith.constant 0 : i32
    %c0_i32_1 = arith.constant 0 : i32
    return %c0_i32, %c0_i32_0 : i32, i32
  }
  func.func @transform_9(%arg0: i32, %arg1: i32) -> (i32, i32) {
    %c0_i32 = arith.constant 0 : i32
    %c0_i32_0 = arith.constant 0 : i32
    return %arg0, %c0_i32 : i32, i32
  }
}

</mosaic_0001>

<bundles_post_ra>
// kernel: tpu_custom_call.1
= control target key start
LH: loop header
LB: loop body
LE: loop exit
PB: predicated region body
PF: predicated region fallthrough
CT: control target
= control target key end

     0   :  { %s2084_s0 = inlined_call_operand.vmem [shape: bf16[256,16], index: 0, kind: input, shape index: {}]   ;;  %s2085_s1 = inlined_call_operand.vmem [shape: f32[256,38], index: 1, kind: input, shape index: {}]   ;;  %s2086_s2 = inlined_call_operand.vmem [shape: bf16[256,256], index: 2, kind: input, shape index: {}]   ;;  %s2087_s3 = inlined_call_operand.vmem [shape: f32[1,16], index: 3, kind: input, shape index: {}]   ;;  %s2088_s4 = inlined_call_operand.vmem [shape: f32[38,36], index: 4, kind: input, shape index: {}]   ;;  %s2089_s5 = inlined_call_operand.vmem [shape: f32[1,36], index: 5, kind: input, shape index: {}]   ;;  %s2090_s6 = inlined_call_operand.vmem [shape: f32[16,36], index: 6, kind: input, shape index: {}]   ;;  %s2091_s7 = inlined_call_operand.vmem [shape: f32[36,128], index: 7, kind: input, shape index: {}]   ;;  %s2092_s8 = inlined_call_operand.vmem [shape: f32[16,128], index: 8, kind: input, shape index: {}]   ;;  %s2093_s9 = inlined_call_operand.hbm [shape: f32[256,128], index: 9, kind: output, shape index: {}]  }
   0x1   :  { %2102 = sst [smem:[#allocation13_spill]] %s2086_s2 }
   0x2   :  { %2103 = sst [smem:[#allocation14_spill]] %s2093_s9 }
   0x3   :  { %14 = vsyncpa [#allocation5], 0 }
   0x4   :  { %16 = vsyncpa [#allocation5 + $0x1], 0  ;;  %s1684_s30 = smov 0   ;;  %s1686_s10 = smov 0  }
   0x5   :  { %s1688_s11 = smov 0   ;;  %s1690_s12 = smov 0  }
   0x6   :  { %s1692_s13 = smov 0   ;;  %s1694_s14 = smov 0  }
   0x7   :  { %s1696_s15 = smov 0   ;;  %s1698_s16 = smov 0  }
   0x8   :  { %s1700_s17 = smov 0   ;;  %s1702_s18 = smov 0  }
   0x9 LB: > { %2104 = sst [smem:[#allocation7_spill]] %s1593_s30  ;;  %s1253_s19 = sadd.s32 4294967295, %s1629_s18   ;;  %s1629_s18 = sphi %s1702_s18, %s22_s18   ;;  %s1625_s17 = sphi %s1700_s17, %s2123_s17   ;;  %s1621_s16 = sphi %s1698_s16, %s2122_s16   ;;  %s1617_s15 = sphi %s1696_s15, %s2121_s15   ;;  %s1613_s14 = sphi %s1694_s14, %s2120_s14   ;;  %s1609_s13 = sphi %s1692_s13, %s2128_s13   ;;  %s1605_s12 = sphi %s1690_s12, %s2127_s12   ;;  %s1601_s11 = sphi %s1688_s11, %s2126_s11   ;;  %s1597_s10 = sphi %s1686_s10, %s2125_s10   ;;  %s1593_s30 = sphi %s1684_s30, %s2124_s30  }
   0xa   : > { %2105 = sst [smem:[#allocation8_spill]] %s1621_s16  ;;  %s1254_s20 = sadd.s32 4294967294, %s1629_s18  }
   0xb   : > { %2106 = sst [smem:[#allocation9_spill]] %s1625_s17  ;;  %s31_s21 = sadd.s32 1, %s1621_s16 }
   0xc   : > { %s34_s22 = sadd.s32 1, %s1625_s17  ;;  %p32_p0 = scmp.ge.s32.totalorder %s31_s21, 2 }
   0xd   : > { %s95_s23 = sadd.s32 1, %s1609_s13  ;;  %p102_p1 = scmp.ne.s32.totalorder %s1609_s13, %s1605_s12 }
   0xe   : > { %p103_p2 = scmp.eq.s32.totalorder %s1629_s18, 0  ;;  %s2130_s21 = smov (%p32_p0, %s31_s21), 0 }
   0xf   : > { %2107 = sst [smem:[#allocation10_spill]] %s2130_s21  ;;  %s2132_s22 = smov (!%p32_p0, %s34_s22), %s1625_s17 }
  0x10   : > { %s91_s24 = ssub.s32 %s1621_s16, %s2130_s21  ;;  %p1747_p3 = por %p103_p2, %p102_p1 }
  0x11   : > { %p36_p4 = scmp.ge.s32.totalorder %s2132_s22, 4  ;;  %s247_s26 = sadd.s32 1, %s1601_s11 }
  0x12   : > { %p257_p5 = scmp.ne.s32.totalorder %s1601_s11, %s1597_s10  ;;  %p258_p6 = scmp.eq.s32.totalorder %s1253_s19, 7 }
  0x13   : > { %s2134_s22 = smov (%p36_p4, %s2132_s22), 0  ;;  %p263_p8 = scmp.ne.s32.totalorder %s1597_s10, %s1593_s30 }
  0x14   : > { %2109 = sst [smem:[#allocation11_spill]] %s2134_s22  ;;  %p1756_p7 = por %p258_p6, %p257_p5 }
  0x15   : > { %s90_s28 = ssub.s32 %s1625_s17, %s2134_s22  ;;  %p264_p9 = scmp.eq.s32.totalorder %s1254_s20, 7 }
  0x16   : > { %s92_s29 = sor.u32 %s91_s24, %s90_s28  ;;  %p245_p10 = scmp.eq.s32.totalorder %s90_s28, 0 }
  0x17   : > { %p93_p11 = scmp.eq.s32.totalorder %s92_s29, 0  ;;  %p1764_p12 = por %p264_p9, %p263_p8 }
  0x18   : > { %s1769_s9 = scalar_select %p245_p10, %s1601_s11, %s247_s26  }
  0x19   : > { %s2111_s21 = scalar_select %p1764_p12, 1, 0 }
  0x1a   : > { %s1772_s19 = scalar_select %p93_p11, %s1609_s13, %s95_s23  }
  0x1b   : > { %2112 = sst [smem:[#allocation12_spill]] %s2111_s21  ;;  %p1256_p13 = scmp.ge.s32.totalorder %s1629_s18, 8 }
  0x1d   : > { %298 = sbr.rel (%p1256_p13) target bundleno = 52 (0x34), region = 40 }
  0x22   : > { %319 = sbr.rel (!%p1747_p3) target bundleno = 52 (0x34), region = 52  ;;  %s321_s20 = sand.u32 (%p1747_p3), 1, %s1609_s13  }
  0x23   : > { %s1357_s24 = sshll.u32 (%p1747_p3), %s1625_s17, 4  ;;  %s1257_s28 = sshll.u32 (%p1747_p3), %s321_s20, 5 }
  0x24   : > { %s326_s29 = sadd.s32 (%p1747_p3), %s1621_s16, %s1357_s24  ;;  %s2113_s2 = sld [smem:[#allocation13_spill]] (%p1747_p3) }
  0x25   : > { %s1260_s22 = sshll.u32 (%p1747_p3), %s326_s29, 2  ;;  %s323_s23 = scalar_lea.vmem (%p1747_p3), [#allocation3], %s1257_s28 }
  0x2a   : > { %s328_s26 = scalar_lea.vmem %s2113_s2, %s1260_s22 }
  0x2b   : > { %v345_v0 = vld [vmem:[%s328_s26] sm:$0xf]  ;;  %v347_v1 = vld [vmem:[%s328_s26 + $0x8] sm:$0xf]  ;;  %v349_v2 = vld [vmem:[%s328_s26 + $0x10] sm:$0xf] }
  0x2c   : > { %346 = vst [vmem:[%s323_s23] sm:$0xf] %v345_v0  ;;  %v351_v3 = vld [vmem:[%s328_s26 + $0x18] sm:$0xf]  ;;  %v353_v4 = vld [vmem:[%s328_s26 + $0x20] sm:$0xf] }
  0x2d   : > { %348 = vst [vmem:[%s323_s23 + $0x4] sm:$0xf] %v347_v1  ;;  %v355_v5 = vld [vmem:[%s328_s26 + $0x28] sm:$0xf]  ;;  %v357_v6 = vld [vmem:[%s328_s26 + $0x30] sm:$0xf] }
  0x2e   : > { %350 = vst [vmem:[%s323_s23 + $0x8] sm:$0xf] %v349_v2  ;;  %v359_v7 = vld [vmem:[%s328_s26 + $0x38] sm:$0xf] }
  0x2f   : > { %352 = vst [vmem:[%s323_s23 + $0xc] sm:$0xf] %v351_v3 }
  0x30   : > { %354 = vst [vmem:[%s323_s23 + $0x10] sm:$0xf] %v353_v4 }
  0x31   : > { %356 = vst [vmem:[%s323_s23 + $0x14] sm:$0xf] %v355_v5 }
  0x32   : > { %358 = vst [vmem:[%s323_s23 + $0x18] sm:$0xf] %v357_v6 }
  0x33   : > { %360 = vst [vmem:[%s323_s23 + $0x1c] sm:$0xf] %v359_v7 }
  0x34 PF: > { %p1261_p0 = scmp.ge.s32.totalorder %s1629_s18, 1  ;;  %p399_p1 = scmp.lt.s32.totalorder %s1629_s18, 9 }
  0x36   : > { %p400_p2 = pnand %p1261_p0, %p399_p1 }
  0x37   : > { %s406_s30 = sand.u32 (!%p400_p2), 1, %s1605_s12   ;;  %s2101_s21 = sand.u32 (!%p400_p2), 1, %s1597_s10  }
  0x38   : > { %403 = sbr.rel (%p400_p2) target bundleno = 864 (0x360), region = 93  ;;  %s1262_s22 = sshll.u32 (!%p400_p2), %s406_s30, 5 }
  0x39   : > { %s1263_s25 = sshll.u32 (!%p400_p2), %s2101_s21, 6  ;;  %s1264_s20 = sshll.u32 (!%p400_p2), %s1613_s14, 4 }
  0x3a   : > { %s1266_s24 = sshll.u32 (!%p400_p2), %s1617_s15, 3  ;;  %p452_p3 = scmp.lt.s32.totalorder (!%p400_p2), %s1264_s20, 31 }
  0x3b   : > { %p458_p4 = scmp.lt.s32.totalorder (!%p400_p2), %s1266_s24, 31  ;;  %s1801_s30 = scalar_lea.vmem (!%p400_p2), [#allocation3], %s1262_s22 }
  0x3c   : > { %s1803_s21 = scalar_lea.vmem (!%p400_p2), [#allocation4], %s1263_s25  ;;  %p1268_p5 = scmp.ne.s32.totalorder (!%p400_p2), %s1613_s14, 0 }
  0x3d   : > { %s2136_s20 = smov (!%p452_p3, %s1264_s20), 31  ;;  %s2138_s24 = smov (!%p458_p4, %s1266_s24), 31 }
  0x3e   : > { %s1265_s28 = sshll.u32 %s2136_s20, 2  ;;  %s1267_s2 = sshll.u32 %s2138_s24, 3 }
  0x3f   : > { %s1794_s23 = scalar_lea.vmem %s2084_s0, %s1265_s28  ;;  %s1799_s12 = scalar_lea.vmem %s2085_s1, %s1267_s2 }
  0x40   : > { %468 = sbr.rel (%p1268_p5) target bundleno = 78 (0x4e), region = 101 }
  0x45   : > { %vm469_vm0 = vcmask 130048   ;;  %v1631_v8 = vmov 0.0  }
  0x46   : > { %470 = vst.msk [vmem:[#allocation2] sm:$0xff] %vm469_vm0, %v1631_v8 }
  0x47   : > { %471 = vst.msk [vmem:[#allocation2 + $0x8] sm:$0xff] %vm469_vm0, %v1631_v8 }
  0x48   : > { %472 = vst.msk [vmem:[#allocation2 + $0x10] sm:$0xff] %vm469_vm0, %v1631_v8 }
  0x49   : > { %473 = vst.msk [vmem:[#allocation2 + $0x18] sm:$0xff] %vm469_vm0, %v1631_v8 }
  0x4a   : > { %474 = vst.msk [vmem:[#allocation2 + $0x20] sm:$0xff] %vm469_vm0, %v1631_v8 }
  0x4b   : > { %475 = vst.msk [vmem:[#allocation2 + $0x28] sm:$0xff] %vm469_vm0, %v1631_v8 }
  0x4c   : > { %476 = vst.msk [vmem:[#allocation2 + $0x30] sm:$0xff] %vm469_vm0, %v1631_v8 }
  0x4d   : > { %477 = vst.msk [vmem:[#allocation2 + $0x38] sm:$0xff] %vm469_vm0, %v1631_v8 }
  0x4e PF: > { %v1369_v9 = vld [vmem:[%s1794_s23 + $0x38] sm:$0xff]  ;;  %v1368_v10 = vld [vmem:[%s1794_s23 + $0x30] sm:$0xff]  ;;  %v1367_v11 = vld [vmem:[%s1794_s23 + $0x28] sm:$0xff]  ;;  %vm619_vm1 = vcmask 130048   ;;  %p1317_p6 = scmp.ne.s32.totalorder %s1613_s14, 1 }
  0x4f   : > { %582 = vmatpush.bf16.msra.mxu0 %v1369_v9  ;;  %1371 = vmatpush.bf16.msra.mxu1 %v1369_v9  ;;  %v1366_v12 = vld [vmem:[%s1794_s23 + $0x20] sm:$0xff]  ;;  %v1365_v13 = vld [vmem:[%s1794_s23 + $0x18] sm:$0xff]  ;;  %v1364_v14 = vld [vmem:[%s1794_s23 + $0x10] sm:$0xff] }
  0x50   : > { %1372 = vmatpush.bf16.msra.mxu2 %v1369_v9  ;;  %1373 = vmatpush.bf16.msra.mxu3 %v1369_v9  ;;  %v1363_v15 = vld [vmem:[%s1794_s23 + $0x8] sm:$0xff]  ;;  %v1362_v16 = vld [vmem:[%s1794_s23] sm:$0xff]  ;;  %v1360_v19 = vld [vmem:[%s1801_s30 + $0x10] sm:$0xff] }
  0x51   : > { %v1358_v17 = vld [vmem:[%s1801_s30] sm:$0xff]  ;;  %v1359_v18 = vld [vmem:[%s1801_s30 + $0x8] sm:$0xff]  ;;  %v1361_v20 = vld [vmem:[%s1801_s30 + $0x18] sm:$0xff] }
  0x52   : > { %v478_v21 = vld [vmem:[#allocation2] sm:$0xff]  ;;  %v480_v22 = vld [vmem:[#allocation2 + $0x10] sm:$0xff]  ;;  %v479_v29 = vld [vmem:[#allocation2 + $0x8] sm:$0xff] }
  0x53   : > { %583 = vmatpush.bf16.msra.mxu0 %v1368_v10  ;;  %1374 = vmatpush.bf16.msra.mxu1 %v1368_v10  ;;  %v482_v27 = vld [vmem:[#allocation2 + $0x20] sm:$0xff]  ;;  %v484_v28 = vld [vmem:[#allocation2 + $0x30] sm:$0xff]  ;;  %v481_v30 = vld [vmem:[#allocation2 + $0x18] sm:$0xff] }
  0x54   : > { %1375 = vmatpush.bf16.msra.mxu2 %v1368_v10  ;;  %1376 = vmatpush.bf16.msra.mxu3 %v1368_v10  ;;  %v483_v39 = vld [vmem:[#allocation2 + $0x28] sm:$0xff]  ;;  %v485_v40 = vld [vmem:[#allocation2 + $0x38] sm:$0xff] }
  0x57   : > { %584 = vmatpush.bf16.msra.mxu0 %v1367_v11  ;;  %1377 = vmatpush.bf16.msra.mxu1 %v1367_v11 }
  0x58   : > { %1378 = vmatpush.bf16.msra.mxu2 %v1367_v11  ;;  %1379 = vmatpush.bf16.msra.mxu3 %v1367_v11 }
  0x5b   : > { %585 = vmatpush.bf16.msra.mxu0 %v1366_v12  ;;  %1380 = vmatpush.bf16.msra.mxu1 %v1366_v12 }
  0x5c   : > { %1381 = vmatpush.bf16.msra.mxu2 %v1366_v12  ;;  %1382 = vmatpush.bf16.msra.mxu3 %v1366_v12 }
  0x5f   : > { %586 = vmatpush.bf16.msra.mxu0 %v1365_v13  ;;  %1383 = vmatpush.bf16.msra.mxu1 %v1365_v13 }
  0x60   : > { %1384 = vmatpush.bf16.msra.mxu2 %v1365_v13  ;;  %1385 = vmatpush.bf16.msra.mxu3 %v1365_v13 }
  0x63   : > { %587 = vmatpush.bf16.msra.mxu0 %v1364_v14  ;;  %1386 = vmatpush.bf16.msra.mxu1 %v1364_v14 }
  0x64   : > { %1387 = vmatpush.bf16.msra.mxu2 %v1364_v14  ;;  %1388 = vmatpush.bf16.msra.mxu3 %v1364_v14 }
  0x67   : > { %588 = vmatpush.bf16.msra.mxu0 %v1363_v15  ;;  %1389 = vmatpush.bf16.msra.mxu1 %v1363_v15 }
  0x68   : > { %1390 = vmatpush.bf16.msra.mxu2 %v1363_v15  ;;  %1391 = vmatpush.bf16.msra.mxu3 %v1363_v15 }
  0x6b   : > { %589 = vmatpush.bf16.msra.mxu0 %v1362_v16  ;;  %1392 = vmatpush.bf16.msra.mxu1 %v1362_v16 }
  0x6c   : > { %1393 = vmatpush.bf16.msra.mxu2 %v1362_v16  ;;  %1394 = vmatpush.bf16.msra.mxu3 %v1362_v16 }
  0x6e   : > { %590 = vmatmul.bf16.vlgmr.msra.gmra.mxu0 %v1358_v17  ;;  %595 = vmatmul.bf16.vlgmr.msra.gmra.mxu1 %v1359_v18 }
  0x6f   : > { %600 = vmatmul.bf16.vlgmr.msra.gmra.mxu2 %v1360_v19  ;;  %605 = vmatmul.bf16.vlgmr.msra.gmra.mxu3 %v1361_v20 }
  0xeb   : > { %v591_v23 = vpop.f32.mrf.mxu0  ;;  %v596_v24 = vpop.f32.mrf.mxu1 }
  0xec   : > { %v611_v25 = vadd.f32 %v591_v23, %v478_v21  ;;  %v613_v26 = vadd.f32 %v596_v24, %v480_v22 }
  0xee   : > { %620 = vst.msk [vmem:[#allocation2] sm:$0xff] %vm619_vm1, %v611_v25 }
  0xef   : > { %622 = vst.msk [vmem:[#allocation2 + $0x10] sm:$0xff] %vm619_vm1, %v613_v26 }
  0xf2   : > { %v601_v31 = vpop.f32.mrf.mxu2  ;;  %v606_v32 = vpop.f32.mrf.mxu3 }
  0xf3   : > { %v615_v33 = vadd.f32 %v601_v31, %v482_v27  ;;  %v617_v34 = vadd.f32 %v606_v32, %v484_v28  ;;  %v593_v35 = vpop.f32.mrf.mxu0  ;;  %v598_v36 = vpop.f32.mrf.mxu1 }
  0xf4   : > { %v612_v37 = vadd.f32 %v593_v35, %v479_v29  ;;  %v614_v38 = vadd.f32 %v598_v36, %v481_v30 }
  0xf5   : > { %624 = vst.msk [vmem:[#allocation2 + $0x20] sm:$0xff] %vm619_vm1, %v615_v33 }
  0xf6   : > { %626 = vst.msk [vmem:[#allocation2 + $0x30] sm:$0xff] %vm619_vm1, %v617_v34 }
  0xf7   : > { %621 = vst.msk [vmem:[#allocation2 + $0x8] sm:$0xff] %vm619_vm1, %v612_v37 }
  0xf8   : > { %623 = vst.msk [vmem:[#allocation2 + $0x18] sm:$0xff] %vm619_vm1, %v614_v38 }
  0xfa   : > { %v603_v41 = vpop.f32.mrf.mxu2  ;;  %v608_v42 = vpop.f32.mrf.mxu3  ;;  %631 = sbr.rel (%p1317_p6) target bundleno = 843 (0x34b), region = 105 }
  0xfb   : > { %v616_v43 = vadd.f32 %v603_v41, %v483_v39  ;;  %v618_v44 = vadd.f32 %v608_v42, %v485_v40 }
  0xfd   : > { %625 = vst.msk [vmem:[#allocation2 + $0x28] sm:$0xff] %vm619_vm1, %v616_v43 }
  0xfe   : > { %627 = vst.msk [vmem:[#allocation2 + $0x38] sm:$0xff] %vm619_vm1, %v618_v44 }
  0xff   : > { %v634_v45 = vld [vmem:[#allocation2 + $0x10] sm:$0xff]  ;;  %v1485_v46 = vld [vmem:[%s2087_s3] ss:$0 sm:$0xff]  ;;  %v635_v52 = vld [vmem:[#allocation2 + $0x18] sm:$0xff]  ;;  %vm886_vm2 = vcmask 1045504   ;;  %vm861_vm3 = vcmask 310272  }
 0x100   : > { %v632_v47 = vld [vmem:[#allocation2] sm:$0xff]  ;;  %v646_v49 = vadd.f32 %v1485_v46, %v634_v45  ;;  %v633_v53 = vld [vmem:[#allocation2 + $0x8] sm:$0xff]  ;;  %v647_v58 = vadd.f32 %v1485_v46, %v635_v52  ;;  %v638_v0 = vld [vmem:[#allocation2 + $0x30] sm:$0xff] }
 0x101   : > { %v636_v48 = vld [vmem:[#allocation2 + $0x20] sm:$0xff]  ;;  %v644_v50 = vadd.f32 %v1485_v46, %v632_v47  ;;  %v645_v59 = vadd.f32 %v1485_v46, %v633_v53  ;;  %v650_v2 = vadd.f32 %v1485_v46, %v638_v0  ;;  %v855_v47 = vld [vmem:[%s2088_s4 + $0x18] sm:$0xff]  ;;  %v1012_v52 = vld [vmem:[%s2092_s8 + $0x8] sm:$0xff] }
 0x102   : > { %v648_v51 = vadd.f32 %v1485_v46, %v636_v48  ;;  %v658_v54 = vsel %vm619_vm1, %v646_v49, -inf  ;;  %v661_v61 = vsel %vm619_vm1, %v647_v58, -inf  ;;  %v854_v48 = vld [vmem:[%s2088_s4 + $0x10] sm:$0xff]  ;;  %v844_v53 = vld [vmem:[%s1799_s12] sm:$0xff]  ;;  %1027 = vmatpush.msra.mxu2 %v1012_v52  ;;  %v847_v0 = vld [vmem:[%s1799_s12 + $0x18] sm:$0xff] }
 0x103   : > { %v652_v55 = vsel %vm619_vm1, %v644_v50, -inf  ;;  %659 = vmax.xlane.f32.xlu1 %v658_v54  ;;  %v655_v62 = vsel %vm619_vm1, %v645_v59, -inf  ;;  %v670_v4 = vsel %vm619_vm1, %v650_v2, -inf  ;;  %v931_v54 = vld [vmem:[%s2090_s6] sm:$0xff] }
 0x104   : > { %v664_v56 = vsel %vm619_vm1, %v648_v51, -inf  ;;  %v637_v57 = vld [vmem:[#allocation2 + $0x28] sm:$0xff]  ;;  %653 = vmax.xlane.f32.xlu0 %v652_v55  ;;  %v1011_v55 = vld [vmem:[%s2092_s8] sm:$0xff] }
 0x105   : > { %665 = vmax.xlane.f32.xlu2 %v664_v56  ;;  %v649_v60 = vadd.f32 %v1485_v46, %v637_v57  ;;  %v639_v1 = vld [vmem:[#allocation2 + $0x38] sm:$0xff]  ;;  %1028 = vmatpush.msra.mxu2 %v1011_v55  ;;  %v845_v56 = vld [vmem:[%s1799_s12 + $0x8] sm:$0xff] }
 0x106   : > { %v651_v3 = vadd.f32 %v1485_v46, %v639_v1  ;;  %v856_v46 = vld [vmem:[%s2088_s4 + $0x20] sm:$0x3f] }
 0x107   : > { %v667_v63 = vsel %vm619_vm1, %v649_v60, -inf  ;;  %1318 = vmatpush.msk.msra.mxu0 %vm886_vm2, %v856_v46 }
 0x108   : > { %v673_v5 = vsel %vm619_vm1, %v651_v3, -inf }
 0x109   : > { %902 = vmatpush.msra.mxu0 %v855_v47 }
 0x10b   : > { %662 = vmax.xlane.f32.xlu1 %v661_v61  ;;  %903 = vmatpush.msra.mxu0 %v854_v48 }
 0x10c   : > { %656 = vmax.xlane.f32.xlu0 %v655_v62 }
 0x10d   : > { %668 = vmax.xlane.f32.xlu2 %v667_v63 }
 0x114   : > { %671 = vmax.xlane.f32.xlu0 %v670_v4 }
 0x115   : > { %674 = vmax.xlane.f32.xlu2 %v673_v5 }
 0x176   : > { %v660_v6 = vpop.xlane.xlu1 %659 }
 0x177   : > { %v654_v7 = vpop.xlane.xlu0 %653  ;;  %v678_v10 = vsub.f32 %v646_v49, %v660_v6  ;;  %v853_v49 = vld [vmem:[%s2088_s4 + $0x8] sm:$0xff] }
 0x178   : > { %v676_v8 = vsub.f32 %v644_v50, %v654_v7  ;;  %v666_v9 = vpop.xlane.xlu2 %665  ;;  %904 = vmatpush.msra.mxu0 %v853_v49  ;;  %v852_v50 = vld [vmem:[%s2088_s4] sm:$0xff]  ;;  %v850_v49 = vld [vmem:[%s1799_s12 + $0x30] sm:$0xff] }
 0x179   : > { %v688_v12 = vmul.f32 1.442695, %v678_v10  ;;  %v680_v15 = vsub.f32 %v648_v51, %v666_v9  ;;  %v932_v51 = vld [vmem:[%s2090_s6 + $0x8] sm:$0xff] }
 0x17a   : > { %v684_v11 = vmul.f32 1.442695, %v676_v8  ;;  %905 = vmatpush.msra.mxu0 %v852_v50  ;;  %971 = vmatpush.msra.mxu1 %v932_v51 }
 0x17b   : > { %v692_v23 = vmul.f32 1.442695, %v680_v15  ;;  %1319 = vmatmul.msk.f32.vlgmr.msra.gmra.mxu0 %vm861_vm3, %v844_v53 }
 0x17c   : > { %1487 = vpow2.f32 %v684_v11  ;;  %972 = vmatpush.msra.mxu1 %v931_v54  ;;  %v848_v11 = vld [vmem:[%s1799_s12 + $0x20] sm:$0xff] }
 0x17d   : > { %1489 = vpow2.f32 %v688_v12 }
 0x17e   : > { %v663_v13 = vpop.xlane.xlu1 %662 }
 0x17f   : > { %v657_v14 = vpop.xlane.xlu0 %656  ;;  %v679_v16 = vsub.f32 %v647_v58, %v663_v13  ;;  %v846_v58 = vld [vmem:[%s1799_s12 + $0x10] sm:$0xff] }
 0x180   : > { %v677_v17 = vsub.f32 %v645_v59, %v657_v14  ;;  %v669_v18 = vpop.xlane.xlu2 %668 }
 0x181   : > { %v681_v19 = vsub.f32 %v649_v60, %v669_v18  ;;  %v690_v20 = vmul.f32 1.442695, %v679_v16 }
 0x182   : > { %v686_v21 = vmul.f32 1.442695, %v677_v17  ;;  %v1838_v22 = vpop.eup %1487 }
 0x183   : > { %1491 = vpow2.f32 %v690_v20  ;;  %v700_v24 = vsel %vm619_vm1, %v1838_v22, 0.0  ;;  %v694_v25 = vmul.f32 1.442695, %v681_v19  ;;  %v1842_v26 = vpop.eup %1489  ;;  %1320 = vmatmul.msk.f32.gmra.mxu0 %vm861_vm3, %v845_v56 }
 0x184   : > { %1493 = vpow2.f32 %v686_v21  ;;  %701 = vadd.xlane.f32.xlu1 %v700_v24  ;;  %v706_v33 = vsel %vm619_vm1, %v1842_v26, 0.0 }
 0x185   : > { %1495 = vpow2.f32 %v692_v23 }
 0x186   : > { %1497 = vpow2.f32 %v694_v25 }
 0x187   : > { %v672_v27 = vpop.xlane.xlu0 %671 }
 0x188   : > { %v682_v28 = vsub.f32 %v650_v2, %v672_v27  ;;  %v675_v29 = vpop.xlane.xlu2 %674 }
 0x189   : > { %v683_v30 = vsub.f32 %v651_v3, %v675_v29  ;;  %v1844_v31 = vpop.eup %1491 }
 0x18a   : > { %v696_v32 = vmul.f32 1.442695, %v682_v28  ;;  %v1848_v34 = vpop.eup %1493  ;;  %v709_v35 = vsel %vm619_vm1, %v1844_v31, 0.0  ;;  %v849_v28 = vld [vmem:[%s1799_s12 + $0x28] sm:$0xff] }
 0x18b   : > { %710 = vadd.xlane.f32.xlu2 %v709_v35  ;;  %v703_v36 = vsel %vm619_vm1, %v1848_v34, 0.0  ;;  %v698_v37 = vmul.f32 1.442695, %v683_v30  ;;  %v1854_v38 = vpop.eup %1495  ;;  %1321 = vmatmul.msk.f32.gmra.mxu0 %vm861_vm3, %v846_v58 }
 0x18c   : > { %1499 = vpow2.f32 %v696_v32  ;;  %707 = vadd.xlane.f32.xlu1 %v706_v33  ;;  %704 = vadd.xlane.f32.xlu0 %v703_v36  ;;  %v1856_v39 = vpop.eup %1497  ;;  %v712_v42 = vsel %vm619_vm1, %v1854_v38, 0.0 }
 0x18d   : > { %1501 = vpow2.f32 %v698_v37  ;;  %v715_v41 = vsel %vm619_vm1, %v1856_v39, 0.0 }
 0x192   : > { %v1858_v40 = vpop.eup %1499 }
 0x193   : > { %v718_v43 = vsel %vm619_vm1, %v1858_v40, 0.0  ;;  %v1866_v44 = vpop.eup %1501  ;;  %1322 = vmatmul.msk.f32.gmra.mxu0 %vm861_vm3, %v847_v0 }
 0x194   : > { %719 = vadd.xlane.f32.xlu2 %v718_v43  ;;  %716 = vadd.xlane.f32.xlu1 %v715_v41  ;;  %v721_v45 = vsel %vm619_vm1, %v1866_v44, 0.0 }
 0x195   : > { %713 = vadd.xlane.f32.xlu0 %v712_v42 }
 0x19b   : > { %1323 = vmatmul.msk.f32.gmra.mxu0 %vm861_vm3, %v848_v11 }
 0x19d   : > { %722 = vadd.xlane.f32.xlu0 %v721_v45 }
 0x1a3   : > { %1324 = vmatmul.msk.f32.gmra.mxu0 %vm861_vm3, %v849_v28 }
 0x1ab   : > { %1325 = vmatmul.msk.f32.gmra.mxu0 %vm861_vm3, %v850_v49 }
 0x1f7   : > { %v702_v57 = vpop.xlane.xlu1 %701 }
 0x1f8   : > { %1503 = vrcp.f32 %v702_v57  ;;  %v735_v3 = vand.u32 2147483648, %v702_v57  ;;  %v733_v6 = vand.u32 2147483647, %v702_v57  ;;  %vm729_vm5 = vweird.f32 %v702_v57 }
 0x1fa   : > { %v736_v10 = vor.u32 1.1754944e-38, %v735_v3  ;;  %vm734_vm7 = vcmp.eq.f32.partialorder %v733_v6, 8.507059e+37 }
 0x1fe   : > { %v1504_v59 = vpop.eup %1503  ;;  %v1907_v1 = vpop.xlane.xlu2 %710 }
 0x1ff   : > { %v725_v60 = vmul.f32 %v1504_v59, %v702_v57  ;;  %v1903_v61 = vpop.xlane.xlu1 %707  ;;  %v705_v62 = vpop.xlane.xlu0 %704  ;;  %vm730_vm4 = vweird.f32 %v1504_v59  ;;  %vm771_vm0 = vweird.f32 %v1907_v1  ;;  %v777_v48 = vand.u32 2147483648, %v1907_v1 }
 0x200   : > { %1505 = vrcp.f32 %v1903_v61  ;;  %vm731_vm6 = vmor %vm729_vm5, %vm730_vm4  ;;  %v749_v20 = vand.u32 2147483648, %v705_v62  ;;  %v747_v21 = vand.u32 2147483647, %v705_v62  ;;  %vm743_vm9 = vweird.f32 %v705_v62 }
 0x201   : > { %v726_v63 = vsub.f32 1.0, %v725_v60  ;;  %1507 = vrcp.f32 %v705_v62  ;;  %vm757_vm12 = vweird.f32 %v1903_v61  ;;  %v763_v37 = vand.u32 2147483648, %v1903_v61  ;;  %v851_v60 = vld [vmem:[%s1799_s12 + $0x38] sm:$0xff] }
 0x202   : > { %1509 = vrcp.f32 %v1907_v1  ;;  %vm748_vm11 = vcmp.eq.f32.partialorder %v747_v21, 8.507059e+37  ;;  %v761_v41 = vand.u32 2147483647, %v1903_v61  ;;  %v775_v52 = vand.u32 2147483647, %v1907_v1  ;;  %1326 = vmatmul.msk.f32.gmra.mxu0 %vm861_vm3, %v851_v60 }
 0x203   : > { %v727_v2 = vmul.f32 %v1504_v59, %v726_v63  ;;  %v764_v45 = vor.u32 1.1754944e-38, %v763_v37  ;;  %v778_v55 = vor.u32 1.1754944e-38, %v777_v48  ;;  %vm1079_vm3 = vcmask 1043456  }
 0x204   : > { %vm762_vm15 = vcmp.eq.f32.partialorder %v761_v41, 8.507059e+37  ;;  %vm776_vm5 = vcmp.eq.f32.partialorder %v775_v52, 8.507059e+37 }
 0x205   : > { %v728_v5 = vadd.f32 %v1504_v59, %v727_v2 }
 0x206   : > { %v1506_v4 = vpop.eup %1505 }
 0x207   : > { %v1508_v7 = vpop.eup %1507  ;;  %v753_v8 = vmul.f32 %v1506_v4, %v1903_v61  ;;  %v732_v15 = vsel %vm731_vm6, %v1504_v59, %v728_v5  ;;  %v1926_v30 = vpop.xlane.xlu1 %716  ;;  %vm758_vm13 = vweird.f32 %v1506_v4 }
 0x208   : > { %v739_v9 = vmul.f32 %v1508_v7, %v705_v62  ;;  %v1913_v14 = vpop.xlane.xlu0 %713  ;;  %v1915_v16 = vpop.eup %1509  ;;  %v737_v17 = vsel %vm734_vm7, %v736_v10, %v732_v15  ;;  %vm744_vm8 = vweird.f32 %v1508_v7  ;;  %vm759_vm14 = vmor %vm757_vm12, %vm758_vm13 }
 0x209   : > { %v754_v12 = vsub.f32 1.0, %v753_v8  ;;  %v836_v19 = vmul.f32 %v1838_v22, %v737_v17  ;;  %1511 = vrcp.f32 %v1913_v14  ;;  %v767_v23 = vmul.f32 %v1915_v16, %v1907_v1  ;;  %vm745_vm10 = vmor %vm743_vm9, %vm744_vm8  ;;  %v1942_v46 = vpop.xlane.xlu2 %719  ;;  %v1009_v8 = vld [vmem:[%s2091_s7 + $0x18] sm:$0xff] }
 0x20a   : > { %v740_v13 = vsub.f32 1.0, %v739_v9  ;;  %v750_v22 = vor.u32 1.1754944e-38, %v749_v20  ;;  %1513 = vrcp.f32 %v1926_v30  ;;  %vm772_vm2 = vweird.f32 %v1915_v16 }
 0x20b   : > { %v755_v24 = vmul.f32 %v1506_v4, %v754_v12  ;;  %1327 = vmatmul.msk.f32.vlgmr.msra.gmra.mxu1 %vm619_vm1, %v836_v19  ;;  %1335 = vmatmul.msk.f32.vlgmr.msra.gmra.mxu2 %vm619_vm1, %v836_v19  ;;  %v768_v29 = vsub.f32 1.0, %v767_v23  ;;  %vm773_vm4 = vmor %vm771_vm0, %vm772_vm2  ;;  %1515 = vrcp.f32 %v1942_v46  ;;  %vm785_vm6 = vweird.f32 %v1913_v14 }
 0x20c   : > { %v741_v18 = vmul.f32 %v1508_v7, %v740_v13  ;;  %v789_v1 = vand.u32 2147483647, %v1913_v14  ;;  %v805_v9 = vand.u32 2147483648, %v1926_v30  ;;  %v803_v13 = vand.u32 2147483647, %v1926_v30 }
 0x20d   : > { %v756_v33 = vadd.f32 %v1506_v4, %v755_v24  ;;  %v769_v42 = vmul.f32 %v1915_v16, %v768_v29  ;;  %v819_v20 = vand.u32 2147483648, %v1942_v46 }
 0x20e   : > { %v742_v25 = vadd.f32 %v1508_v7, %v741_v18  ;;  %vm790_vm9 = vcmp.eq.f32.partialorder %v789_v1, 8.507059e+37  ;;  %vm804_vm13 = vcmp.eq.f32.partialorder %v803_v13, 8.507059e+37 }
 0x20f   : > { %v1928_v35 = vpop.eup %1511  ;;  %v770_v51 = vadd.f32 %v1915_v16, %v769_v42  ;;  %v1008_v42 = vld [vmem:[%s2091_s7 + $0x10] sm:$0xff] }
 0x210   : > { %v746_v27 = vsel %vm745_vm10, %v1508_v7, %v742_v25  ;;  %v781_v43 = vmul.f32 %v1928_v35, %v1913_v14  ;;  %v1514_v53 = vpop.eup %1513  ;;  %vm786_vm7 = vweird.f32 %v1928_v35  ;;  %v1960_v63 = vpop.xlane.xlu0 %722  ;;  %vm799_vm10 = vweird.f32 %v1926_v30 }
 0x211   : > { %v751_v32 = vsel %vm748_vm11, %v750_v22, %v746_v27  ;;  %v795_v56 = vmul.f32 %v1514_v53, %v1926_v30  ;;  %v774_v58 = vsel %vm773_vm4, %v1915_v16, %v770_v51  ;;  %v1516_v61 = vpop.eup %1515  ;;  %vm1964_vm8 = vmor %vm785_vm6, %vm786_vm7  ;;  %1517 = vrcp.f32 %v1960_v63 }
 0x212   : > { %v837_v36 = vmul.f32 %v1848_v34, %v751_v32  ;;  %v760_v34 = vsel %vm759_vm14, %v1506_v4, %v756_v33  ;;  %v782_v50 = vsub.f32 1.0, %v781_v43  ;;  %v779_v59 = vsel %vm776_vm5, %v778_v55, %v774_v58  ;;  %v1006_v43 = vld [vmem:[%s2091_s7] sm:$0xff] }
 0x213   : > { %v765_v47 = vsel %vm762_vm15, %v764_v45, %v760_v34  ;;  %v796_v62 = vsub.f32 1.0, %v795_v56  ;;  %v839_v3 = vmul.f32 %v1844_v31, %v779_v59  ;;  %v809_v4 = vmul.f32 %v1516_v61, %v1942_v46  ;;  %v1010_v31 = vld [vmem:[%s2091_s7 + $0x20] sm:$0xf] }
 0x214   : > { %1328 = vmatmul.msk.f32.gmra.mxu1 %vm619_vm1, %v837_v36  ;;  %1336 = vmatmul.msk.f32.gmra.mxu2 %vm619_vm1, %v837_v36  ;;  %v838_v54 = vmul.f32 %v1842_v26, %v765_v47  ;;  %v783_v57 = vmul.f32 %v1928_v35, %v782_v50  ;;  %v791_v26 = vand.u32 2147483648, %v1913_v14  ;;  %vm800_vm11 = vweird.f32 %v1514_v53  ;;  %v1486_v45 = vld [vmem:[%s2089_s5] ss:$0 sm:$0xff] }
 0x215   : > { %v797_v6 = vmul.f32 %v1514_v53, %v796_v62  ;;  %1343 = vmatpush.msk.msra.mxu3 %vm1079_vm3, %v1010_v31  ;;  %v810_v11 = vsub.f32 1.0, %v809_v4  ;;  %vm801_vm12 = vmor %vm799_vm10, %vm800_vm11  ;;  %v806_v16 = vor.u32 1.1754944e-38, %v805_v9  ;;  %vm813_vm14 = vweird.f32 %v1942_v46 }
 0x216   : > { %v784_v0 = vadd.f32 %v1928_v35, %v783_v57  ;;  %v792_v5 = vor.u32 1.1754944e-38, %v791_v26  ;;  %vm814_vm15 = vweird.f32 %v1516_v61  ;;  %v820_v22 = vor.u32 1.1754944e-38, %v819_v20 }
 0x217   : > { %1095 = vmatpush.msra.mxu3 %v1009_v8  ;;  %v798_v12 = vadd.f32 %v1514_v53, %v797_v6  ;;  %v1518_v14 = vpop.eup %1517  ;;  %v811_v17 = vmul.f32 %v1516_v61, %v810_v11  ;;  %vm815_vm0 = vmor %vm813_vm14, %vm814_vm15  ;;  %vm827_vm4 = vweird.f32 %v1960_v63  ;;  %v833_v29 = vand.u32 2147483648, %v1960_v63 }
 0x218   : > { %v788_v7 = vsel %vm1964_vm8, %v1928_v35, %v784_v0  ;;  %v823_v18 = vmul.f32 %v1518_v14, %v1960_v63  ;;  %vm828_vm5 = vweird.f32 %v1518_v14  ;;  %v831_v33 = vand.u32 2147483647, %v1960_v63 }
 0x219   : > { %v793_v10 = vsel %vm790_vm9, %v792_v5, %v788_v7  ;;  %v802_v19 = vsel %vm801_vm12, %v1514_v53, %v798_v12  ;;  %v812_v24 = vadd.f32 %v1516_v61, %v811_v17  ;;  %vm829_vm6 = vmor %vm827_vm4, %vm828_vm5  ;;  %v834_v35 = vor.u32 1.1754944e-38, %v833_v29  ;;  %1096 = vmatpush.msra.mxu3 %v1008_v42 }
 0x21a   : > { %v840_v15 = vmul.f32 %v1854_v38, %v793_v10  ;;  %v807_v21 = vsel %vm804_vm13, %v806_v16, %v802_v19  ;;  %v824_v23 = vsub.f32 1.0, %v823_v18  ;;  %v817_v38 = vand.u32 2147483647, %v1942_v46 }
 0x21b   : > { %v841_v25 = vmul.f32 %v1856_v39, %v807_v21  ;;  %v816_v28 = vsel %vm815_vm0, %v1516_v61, %v812_v24  ;;  %vm832_vm7 = vcmp.eq.f32.partialorder %v831_v33, 8.507059e+37 }
 0x21c   : > { %1329 = vmatmul.msk.f32.gmra.mxu1 %vm619_vm1, %v838_v54  ;;  %1337 = vmatmul.msk.f32.gmra.mxu2 %vm619_vm1, %v838_v54  ;;  %v825_v27 = vmul.f32 %v1518_v14, %v824_v23  ;;  %vm818_vm2 = vcmp.eq.f32.partialorder %v817_v38, 8.507059e+37 }
 0x21d   : > { %v821_v30 = vsel %vm818_vm2, %v820_v22, %v816_v28 }
 0x21e   : > { %v826_v32 = vadd.f32 %v1518_v14, %v825_v27  ;;  %v842_v39 = vmul.f32 %v1858_v40, %v821_v30  ;;  %v1007_v40 = vld [vmem:[%s2091_s7 + $0x8] sm:$0xff] }
 0x21f   : > { %1097 = vmatpush.msra.mxu3 %v1007_v40 }
 0x220   : > { %v830_v36 = vsel %vm829_vm6, %v1518_v14, %v826_v32 }
 0x221   : > { %v835_v37 = vsel %vm832_vm7, %v834_v35, %v830_v36  ;;  %1098 = vmatpush.msra.mxu3 %v1006_v43 }
 0x222   : > { %v843_v41 = vmul.f32 %v1866_v44, %v835_v37  ;;  %v907_v44 = vpop.f32.mrf.mxu0 }
 0x223   : > { %v908_v46 = vadd.f32 %v1486_v45, %v907_v44 }
 0x224   : > { %1330 = vmatmul.msk.f32.gmra.mxu1 %vm619_vm1, %v839_v3  ;;  %1338 = vmatmul.msk.f32.gmra.mxu2 %vm619_vm1, %v839_v3 }
 0x22a   : > { %v910_v34 = vpop.f32.mrf.mxu0 }
 0x22b   : > { %v911_v50 = vadd.f32 %v1486_v45, %v910_v34 }
 0x22c   : > { %1331 = vmatmul.msk.f32.gmra.mxu1 %vm619_vm1, %v840_v15  ;;  %1339 = vmatmul.msk.f32.gmra.mxu2 %vm619_vm1, %v840_v15 }
 0x232   : > { %v913_v48 = vpop.f32.mrf.mxu0 }
 0x233   : > { %v914_v54 = vadd.f32 %v1486_v45, %v913_v48 }
 0x234   : > { %1332 = vmatmul.msk.f32.gmra.mxu1 %vm619_vm1, %v841_v25  ;;  %1340 = vmatmul.msk.f32.gmra.mxu2 %vm619_vm1, %v841_v25 }
 0x23a   : > { %v916_v53 = vpop.f32.mrf.mxu0 }
 0x23b   : > { %v917_v58 = vadd.f32 %v1486_v45, %v916_v53 }
 0x23c   : > { %1333 = vmatmul.msk.f32.gmra.mxu1 %vm619_vm1, %v842_v39  ;;  %1341 = vmatmul.msk.f32.gmra.mxu2 %vm619_vm1, %v842_v39 }
 0x242   : > { %v919_v57 = vpop.f32.mrf.mxu0 }
 0x243   : > { %v920_v60 = vadd.f32 %v1486_v45, %v919_v57 }
 0x244   : > { %1334 = vmatmul.msk.f32.gmra.mxu1 %vm619_vm1, %v843_v41  ;;  %1342 = vmatmul.msk.f32.gmra.mxu2 %vm619_vm1, %v843_v41  ;;  %vm1054_vm1 = vcmask 293888  }
 0x24a   : > { %v922_v61 = vpop.f32.mrf.mxu0 }
 0x24b   : > { %v923_v0 = vadd.f32 %v1486_v45, %v922_v61 }
 0x252   : > { %v925_v2 = vpop.f32.mrf.mxu0 }
 0x253   : > { %v926_v4 = vadd.f32 %v1486_v45, %v925_v2 }
 0x27f   : > { %v928_v7 = vpop.f32.mrf.mxu0 }
 0x280   : > { %v929_v31 = vadd.f32 %v1486_v45, %v928_v7 }
 0x288   : > { %v974_v47 = vpop.f32.mrf.mxu1 }
 0x289   : > { %v998_v49 = vmul.f32 %v974_v47, %v908_v46 }
 0x28b   : > { %1344 = vmatmul.msk.f32.vlgmr.msra.gmra.mxu3 %vm1054_vm1, %v998_v49 }
 0x28e   : > { %v1030_v10 = vpop.f32.mrf.mxu2 }
 0x291   : > { %v977_v51 = vpop.f32.mrf.mxu1 }
 0x292   : > { %v999_v52 = vmul.f32 %v977_v51, %v911_v50 }
 0x294   : > { %1345 = vmatmul.msk.f32.gmra.mxu3 %vm1054_vm1, %v999_v52 }
 0x297   : > { %v1033_v11 = vpop.f32.mrf.mxu2 }
 0x299   : > { %v980_v55 = vpop.f32.mrf.mxu1 }
 0x29a   : > { %v1000_v56 = vmul.f32 %v980_v55, %v914_v54 }
 0x29c   : > { %1346 = vmatmul.msk.f32.gmra.mxu3 %vm1054_vm1, %v1000_v56 }
 0x29f   : > { %v1036_v14 = vpop.f32.mrf.mxu2 }
 0x2a1   : > { %v983_v59 = vpop.f32.mrf.mxu1 }
 0x2a2   : > { %v1001_v26 = vmul.f32 %v983_v59, %v917_v58 }
 0x2a4   : > { %1347 = vmatmul.msk.f32.gmra.mxu3 %vm1054_vm1, %v1001_v26 }
 0x2a7   : > { %v1039_v17 = vpop.f32.mrf.mxu2 }
 0x2a9   : > { %v986_v62 = vpop.f32.mrf.mxu1 }
 0x2aa   : > { %v1002_v63 = vmul.f32 %v986_v62, %v920_v60 }
 0x2ac   : > { %1348 = vmatmul.msk.f32.gmra.mxu3 %vm1054_vm1, %v1002_v63 }
 0x2af   : > { %v1042_v23 = vpop.f32.mrf.mxu2 }
 0x2b1   : > { %v989_v1 = vpop.f32.mrf.mxu1 }
 0x2b2   : > { %v1003_v3 = vmul.f32 %v989_v1, %v923_v0 }
 0x2b4   : > { %1349 = vmatmul.msk.f32.gmra.mxu3 %vm1054_vm1, %v1003_v3 }
 0x2b7   : > { %v1045_v25 = vpop.f32.mrf.mxu2 }
 0x2b9   : > { %v992_v5 = vpop.f32.mrf.mxu1 }
 0x2ba   : > { %v1004_v6 = vmul.f32 %v992_v5, %v926_v4 }
 0x2bc   : > { %1350 = vmatmul.msk.f32.gmra.mxu3 %vm1054_vm1, %v1004_v6 }
 0x2bf   : > { %v1048_v28 = vpop.f32.mrf.mxu2 }
 0x2c1   : > { %v995_v8 = vpop.f32.mrf.mxu1 }
 0x2c2   : > { %v1005_v9 = vmul.f32 %v995_v8, %v929_v31 }
 0x2c4   : > { %1351 = vmatmul.msk.f32.gmra.mxu3 %vm1054_vm1, %v1005_v9 }
 0x2c7   : > { %v1051_v32 = vpop.f32.mrf.mxu2 }
 0x30e   : > { %v1100_v12 = vpop.f32.mrf.mxu3 }
 0x30f   : > { %v1101_v13 = vadd.f32 %v1100_v12, %v1030_v10 }
 0x311   : > { %1124 = vst [vmem:[%s1803_s21] sm:$0xff] %v1101_v13 }
 0x317   : > { %v1103_v15 = vpop.f32.mrf.mxu3 }
 0x318   : > { %v1104_v16 = vadd.f32 %v1103_v15, %v1033_v11 }
 0x31a   : > { %1125 = vst [vmem:[%s1803_s21 + $0x8] sm:$0xff] %v1104_v16 }
 0x31f   : > { %v1106_v18 = vpop.f32.mrf.mxu3 }
 0x320   : > { %v1107_v19 = vadd.f32 %v1106_v18, %v1036_v14 }
 0x322   : > { %1126 = vst [vmem:[%s1803_s21 + $0x10] sm:$0xff] %v1107_v19 }
 0x327   : > { %v1109_v20 = vpop.f32.mrf.mxu3 }
 0x328   : > { %v1110_v21 = vadd.f32 %v1109_v20, %v1039_v17 }
 0x32a   : > { %1127 = vst [vmem:[%s1803_s21 + $0x18] sm:$0xff] %v1110_v21 }
 0x32f   : > { %v1112_v24 = vpop.f32.mrf.mxu3 }
 0x330   : > { %v1113_v38 = vadd.f32 %v1112_v24, %v1042_v23 }
 0x332   : > { %1128 = vst [vmem:[%s1803_s21 + $0x20] sm:$0xff] %v1113_v38 }
 0x337   : > { %v1115_v22 = vpop.f32.mrf.mxu3 }
 0x338   : > { %v1116_v27 = vadd.f32 %v1115_v22, %v1045_v25 }
 0x33a   : > { %1129 = vst [vmem:[%s1803_s21 + $0x28] sm:$0xff] %v1116_v27 }
 0x33f   : > { %v1118_v29 = vpop.f32.mrf.mxu3 }
 0x340   : > { %v1119_v30 = vadd.f32 %v1118_v29, %v1048_v28 }
 0x342   : > { %1130 = vst [vmem:[%s1803_s21 + $0x30] sm:$0xff] %v1119_v30 }
 0x347   : > { %v1121_v33 = vpop.f32.mrf.mxu3 }
 0x348   : > { %v1122_v39 = vadd.f32 %v1121_v33, %v1051_v32 }
 0x34a   : > { %1131 = vst [vmem:[%s1803_s21 + $0x38] sm:$0xff] %v1122_v39 }
 0x34b PF: > { %s1370_s25 = sshll.u32 %s1617_s15, 6  ;;  %s2116_s24 = sld [smem:[#allocation14_spill]] }
 0x34c   : > { %s1145_s29 = sshll.u32 %s1803_s21, 4  ;;  %s2117_s23 = sand.u32 1, %s1597_s10   ;;  %s1146_s29 = int_to_ptr.vmem [resolvable:$true] %s1145_s29 }
 0x34d   : > { %s1133_s30 = scalar_lea.sflag [#allocation5], %s2117_s23 }
 0x351   : > { %s1144_s28 = scalar_lea.hbm %s2116_s24, %s1370_s25  ;;  %s1539_s15 = scalar_lea.hbm %s2116_s24, 256 }
 0x352   : > { %s1147_s26 = sshll.u32 %s1144_s28, 4  ;;  %s1148_s26 = int_to_ptr.hbm [resolvable:$true] %s1147_s26 }
 0x353   : > { %s1533_s2 = sshra.s32 %s1148_s26, 4  ;;  %s1534_s2 = int_to_ptr.hbm [resolvable:$true] %s1533_s2 }
 0x354   : > { %s1535_s16 = scalar_lea.hbm %s1534_s2, 64  ;;  %p1540_p11 = scmp.lt.s32.totalorder %s1534_s2, %s2116_s24 }
 0x355   : > { %p1536_p8 = scmp.ne.s32.totalorder %s1534_s2, %s1535_s16  ;;  %p1541_p13 = scmp.lt.s32.totalorder %s1539_s15, %s1535_s16 }
 0x357   : > { %p1537_p9 = pnand %p1536_p8, %p1756_p7  ;;  %p1542_p0 = por %p1541_p13, %p1540_p11 }
 0x359   : > { %p1538_p10 = pneg %p1537_p9 }
 0x35b   : > { %p1543_p1 = pnand %p1542_p0, %p1538_p10 }
 0x35d   : > { %1546 = shalt.err (!%p1543_p1)
}
 0x35e   : > { %s1632_s21 = smov 128   ;;  %s1633_s25 = smov 8  }
 0x35f   : > { %1395 = dma.vmem_to_hbm [thread:$0]  (%p1756_p7), %s1146_s29, 1024, %s1148_s26, %s1133_s30, %s1632_s21, %s1632_s21, %s1633_s25  }
 0x360 PF: > { %s2118_s12 = sld [smem:[#allocation7_spill]]  ;;  %p1401_p2 = scmp.ge.s32.totalorder %s1629_s18, 2 }
 0x362   : > { %p1398_p3 = pnand %p1401_p2, %p1764_p12 }
 0x364   : > { %p1399_p4 = pneg %p1398_p3 }
 0x366   : > { %s1162_s23 = sand.u32 1, %s2118_s12  }
 0x367   : > { %s1163_s14 = scalar_lea.sflag [#allocation5], %s1162_s23 }
 0x368   : > { %1588 = dma.done.wait (%p1399_p4), %s1163_s14, 1024  }
 0x369   : > { %1590 = vsyncadd (%p1399_p4), %s1163_s14, 4294966272  ;;  %s22_s18 = sadd.s32 1, %s1629_s18   ;;  %s2120_s14 = sld [smem:[#allocation8_spill]] }
 0x36a   : > { %p19_p5 = scmp.ge.s32.totalorder %s22_s18, 10   ;;  %s2121_s15 = sld [smem:[#allocation9_spill]] }
 0x36b   : > { %s2122_s16 = sld [smem:[#allocation10_spill]]  ;;  %s2124_s30 = smov %s1597_s10 }
 0x36c   : > { %s2123_s17 = sld [smem:[#allocation11_spill]]  ;;  %s2125_s10 = smov %s1601_s11 }
 0x36d   : > { %s2126_s11 = smov %s1769_s9  ;;  %s2127_s12 = smov %s1609_s13 }
 0x36e   : > { %s2128_s13 = smov %s1772_s19  ;;  %21 = sbr.rel (!%p19_p5) target bundleno = 9 (0x9), region = 151 }
 0x373   :  { %1169 = vsyncpa [#allocation5], 1 }
 0x374   :  { %1171 = vsyncpa [#allocation5 + $0x1], 1 }

</bundles_post_ra>
